<compile_context>
chip_gen: v6e
topology: v6e:2x2x1
jax: 0.10.0
libtpu: 0.0.40
codegen_flags: <defaults>
</compile_context>

<pallas_src>
import functools

import jax
import jax.numpy as jnp
from jax import lax
from jax.experimental import pallas as pl
from jax.experimental.pallas import tpu as pltpu


def _round_up(n, m):
    return ((n + m - 1) // m) * m


def _softmax_loss_kernel(x_ref, w_ref, b_ref, lab_ref, loss_ref, prec_ref,
                         m_ref, l_ref, bl_ref, bi_ref, la_ref, acc_ref,
                         *, tb, tcp, batch):
    pb = pl.program_id(0)          # batch-tile index (outer)
    pc = pl.program_id(1)          # class-tile index (inner / fastest)
    nb = pl.num_programs(0)
    nc = pl.num_programs(1)

    @pl.when((pb == 0) & (pc == 0))
    def _():
        acc_ref[0] = 0.0           # sum of per-row losses
        acc_ref[1] = 0.0           # sum of correct top-1 predictions

    @pl.when(pc == 0)              # new batch tile -> reset per-row state
    def _():
        m_ref[...] = jnp.full_like(m_ref, -jnp.inf)
        l_ref[...] = jnp.zeros_like(l_ref)
        bl_ref[...] = jnp.full_like(bl_ref, -jnp.inf)
        bi_ref[...] = jnp.full_like(bi_ref, jnp.iinfo(jnp.int32).max)
        la_ref[...] = jnp.zeros_like(la_ref)

    # logits tile = x @ W_tile^T + b_tile : bf16 MXU inputs, f32 accumulation.
    x_bf = x_ref[...].astype(jnp.bfloat16)                # in-kernel cast
    logits = lax.dot_general(
        x_bf, w_ref[...],
        dimension_numbers=(((1,), (1,)), ((), ())),
        preferred_element_type=jnp.float32)               # (TB, TCp) f32
    logits = logits + b_ref[...]                          # padded classes -> -1e30

    lab = lab_ref[...]                                    # (TB, 1) int32
    g_iota = pc * tcp + lax.broadcasted_iota(jnp.int32, (tb, tcp), 1)

    # Online (flash-style) log-sum-exp across class tiles.
    tile_max = jnp.max(logits, axis=-1, keepdims=True)                    # (TB, 1)
    m_new = jnp.maximum(m_ref[...], tile_max)
    l_ref[...] = (l_ref[...] * jnp.exp(m_ref[...] - m_new)
                  + jnp.sum(jnp.exp(logits - m_new), axis=-1, keepdims=True))
    m_ref[...] = m_new

    # Label-logit gather: exactly one class tile holds each label.
    la_ref[...] += jnp.sum(jnp.where(g_iota == lab, logits, 0.0),
                           axis=-1, keepdims=True)

    # Running top-1 with explicit (best_logit, best_idx); lowest index wins
    # ties within a tile (min over equal max) and across tiles (strict >).
    tile_arg = jnp.min(jnp.where(logits == tile_max, g_iota,
                                 jnp.iinfo(jnp.int32).max),
                       axis=-1, keepdims=True)
    better = tile_max > bl_ref[...]
    bi_ref[...] = jnp.where(better, tile_arg, bi_ref[...])
    bl_ref[...] = jnp.where(better, tile_max, bl_ref[...])

    @pl.when(pc == nc - 1)
    def _():
        lse = m_ref[...] + jnp.log(l_ref[...])
        row_loss = lse - la_ref[...]
        row = pb * tb + lax.broadcasted_iota(jnp.int32, (tb, 1), 0)
        valid = row < batch
        # Select (not multiply) so stale out-of-bounds rows (possible NaN/Inf)
        # contribute exactly 0.
        acc_ref[0] += jnp.sum(jnp.where(valid, row_loss, 0.0))
        acc_ref[1] += jnp.sum(jnp.where(valid & (bi_ref[...] == lab), 1.0, 0.0))

    @pl.when((pb == nb - 1) & (pc == nc - 1))
    def _():
        inv_b = 1.0 / batch
        loss_ref[0, 0] = acc_ref[0] * inv_b
        prec_ref[0, 0] = acc_ref[1] * (100.0 * inv_b)


def softmax_loss(x, W, b, labels, *, batch_tile=512, class_tile=2048):
    """x: (B, E), W: (C, E), b: (C,), labels: (B,) int.
    Returns (loss, prec1) scalars, matching LossFunction.forward."""
    B, E = x.shape
    C = W.shape[0]

    # Class tiling: lane-dense tiles; padded classes get a -1e30 bias.
    TCp = min(_round_up(C, 128), class_tile)
    Cp = _round_up(C, TCp)
    nc = Cp // TCp

    # Batch tiling: no padded copy of x.  Either a full-array batch dim
    # (B < batch_tile) or an 8/128-aligned tile with a masked partial last tile.
    TB = batch_tile if B >= batch_tile else B
    nb = pl.cdiv(B, TB)

    # W / bias cast + class-padded once per call (O(C*E), small vs x stream).
    # TODO(synk): cache the padded bf16 W across training steps.
    w_p = jnp.zeros((Cp, E), jnp.bfloat16).at[:C, :].set(W.astype(jnp.bfloat16))
    b_p = jnp.full((1, Cp), -1e30, jnp.float32).at[0, :C].set(b.astype(jnp.float32))
    lab2 = labels.astype(jnp.int32).reshape(B, 1)

    kernel = functools.partial(_softmax_loss_kernel, tb=TB, tcp=TCp, batch=B)

    if nc == 1:
        # W is fully resident: single-buffer it (constant index_map) to halve
        # its VMEM footprint (matters most on v7x's 64 MiB VMEM).
        w_spec = pl.BlockSpec((TCp, E), lambda i, c: (0, 0),
                              pipeline_mode=pl.Buffered(1))
    else:
        w_spec = pl.BlockSpec((TCp, E), lambda i, c: (c, 0))

    cost = pl.CostEstimate(
        flops=2 * B * E * Cp,
        transcendentals=B * Cp,
        bytes_accessed=B * E * x.dtype.itemsize + Cp * E * 2 + Cp * 4 + B * 4 + 8)

    loss, prec = pl.pallas_call(
        kernel,
        out_shape=(
            jax.ShapeDtypeStruct((1, 1), jnp.float32),
            jax.ShapeDtypeStruct((1, 1), jnp.float32),
        ),
        grid=(nb, nc),
        in_specs=[
            pl.BlockSpec((TB, E), lambda i, c: (i, 0)),    # x: f32 stream, cast in-kernel
            w_spec,                                        # W: bf16, class-tiled
            pl.BlockSpec((1, TCp), lambda i, c: (0, c)),   # bias (-1e30 class padding)
            pl.BlockSpec((TB, 1), lambda i, c: (i, 0)),    # labels
        ],
        out_specs=(
            pl.BlockSpec((1, 1), lambda i, c: (0, 0),
                         memory_space=pltpu.MemorySpace.SMEM),
            pl.BlockSpec((1, 1), lambda i, c: (0, 0),
                         memory_space=pltpu.MemorySpace.SMEM),
        ),
        scratch_shapes=[
            pltpu.VMEM((TB, 1), jnp.float32),   # running max m
            pltpu.VMEM((TB, 1), jnp.float32),   # running sum-exp l
            pltpu.VMEM((TB, 1), jnp.float32),   # best logit
            pltpu.VMEM((TB, 1), jnp.int32),     # best index (argmax)
            pltpu.VMEM((TB, 1), jnp.float32),   # accumulated label logit
            pltpu.SMEM((2,), jnp.float32),      # (sum loss, sum correct)
        ],
        compiler_params=pltpu.CompilerParams(
            # Serial accumulator axes; see TODO about per-core partials on v7x.
            dimension_semantics=("arbitrary", "arbitrary"),
            # Explicit cap: above the 16/32 MiB scoped defaults, below v7x's
            # 64 MiB physical VMEM.
            vmem_limit_bytes=48 * 1024 * 1024),
        cost_estimate=cost,
    )(x, w_p, b_p, lab2)
    return loss[0, 0], prec[0, 0]


def _reference(x, W, b, labels):
    # Same bf16-MXU / f32-accumulate matmul as the kernel for apples-to-apples.
    logits = jnp.dot(x.astype(jnp.bfloat16), W.astype(jnp.bfloat16).T,
                     preferred_element_type=jnp.float32) + b
    lse = jax.scipy.special.logsumexp(logits, axis=-1)
    lbl_logit = jnp.take_along_axis(logits, labels[:, None], axis=-1)[:, 0]
    loss = jnp.mean(lse - lbl_logit)
    prec = 100.0 * jnp.mean((jnp.argmax(logits, axis=-1) == labels).astype(jnp.float32))
    return loss, prec


if __name__ == "__main__":
    B, E, C = 8, 32, 16  # batch, embedding_size, num_classes

    key = jax.random.PRNGKey(0)
    kx, kw, kb, kl = jax.random.split(key, 4)

    # Deterministic parameter init (nn.Linear-style uniform in [-1/sqrt(E), 1/sqrt(E)])
    bound = 1.0 / (E ** 0.5)
    W = jax.random.uniform(kw, (C, E), jnp.float32, -bound, bound)
    b = jax.random.uniform(kb, (C,), jnp.float32, -bound, bound)

    x = jax.random.normal(kx, (B, E), jnp.float32)
    labels = jax.random.randint(kl, (B,), 0, C, jnp.int32)

    loss, prec = softmax_loss(x, W, b, labels)
    jax.block_until_ready((loss, prec))

    ref_loss, ref_prec = _reference(x, W, b, labels)
    assert jnp.allclose(loss, ref_loss, atol=2e-3, rtol=2e-3), (loss, ref_loss)
    assert jnp.allclose(prec, ref_prec, atol=1e-4, rtol=1e-4), (prec, ref_prec)

    print("KERNEL_OK")
</pallas_src>

<mosaic_0001>
module attributes {stable_mosaic.version = 11 : i64} {
  func.func @_softmax_loss_kernel(%arg0: i32, %arg1: i32, %arg2: memref<8x32xf32, #tpu.memory_space<vmem>>, %arg3: memref<128x32xbf16, #tpu.memory_space<vmem>>, %arg4: memref<1x128xf32, #tpu.memory_space<vmem>>, %arg5: memref<8x1xi32, #tpu.memory_space<vmem>>, %arg6: memref<1x1xf32, #tpu.memory_space<smem>>, %arg7: memref<1x1xf32, #tpu.memory_space<smem>>, %arg8: memref<8x1xf32, #tpu.memory_space<vmem>>, %arg9: memref<8x1xf32, #tpu.memory_space<vmem>>, %arg10: memref<8x1xf32, #tpu.memory_space<vmem>>, %arg11: memref<8x1xi32, #tpu.memory_space<vmem>>, %arg12: memref<8x1xf32, #tpu.memory_space<vmem>>, %arg13: memref<2xf32, #tpu.memory_space<smem>>) attributes {dimension_semantics = [#tpu.dimension_semantics<arbitrary>, #tpu.dimension_semantics<arbitrary>], iteration_bounds = array<i64: 1, 1>, scalar_prefetch = 0 : i64, scratch_operands = 6 : i64, tpu.core_type = #tpu.core_type<tc>, window_params = [{transform_indices = @transform_0, window_bounds = array<i64: 8, 32>}, {pipeline_mode = #tpu.pipeline_mode<synchronous>, transform_indices = @transform_1, window_bounds = array<i64: 128, 32>}, {transform_indices = @transform_2, window_bounds = array<i64: 1, 128>}, {transform_indices = @transform_3, window_bounds = array<i64: 8, 1>}, {transform_indices = @transform_4, window_bounds = array<i64: 1, 1>}, {transform_indices = @transform_5, window_bounds = array<i64: 1, 1>}]} {
    %c0_i32 = arith.constant 0 : i32
    %0 = arith.cmpi eq, %arg0, %c0_i32 : i32
    %c0_i32_0 = arith.constant 0 : i32
    %1 = arith.cmpi eq, %arg1, %c0_i32_0 : i32
    %2 = arith.andi %0, %1 : i1
    %3 = arith.extui %2 : i1 to i32
    %c0_i32_1 = arith.constant 0 : i32
    %4 = arith.cmpi ne, %3, %c0_i32_1 : i32
    scf.if %4 {
      %cst_45 = arith.constant 0.000000e+00 : f32
      %c0_46 = arith.constant 0 : index
      %68 = memref.load %arg13[%c0_46] : memref<2xf32, #tpu.memory_space<smem>>
      memref.store %cst_45, %arg13[%c0_46] : memref<2xf32, #tpu.memory_space<smem>>
      %cst_47 = arith.constant 0.000000e+00 : f32
      %c1 = arith.constant 1 : index
      %69 = memref.load %arg13[%c1] : memref<2xf32, #tpu.memory_space<smem>>
      memref.store %cst_47, %arg13[%c1] : memref<2xf32, #tpu.memory_space<smem>>
    } else {
    }
    %c0_i32_2 = arith.constant 0 : i32
    %5 = arith.cmpi eq, %arg1, %c0_i32_2 : i32
    %6 = arith.extui %5 : i1 to i32
    %c0_i32_3 = arith.constant 0 : i32
    %7 = arith.cmpi ne, %6, %c0_i32_3 : i32
    scf.if %7 {
      %cst_45 = arith.constant 0xFF800000 : f32
      %68 = vector.broadcast %cst_45 : f32 to vector<8x1xf32>
      %c0_46 = arith.constant 0 : index
      %c0_47 = arith.constant 0 : index
      %69 = vector.load %arg8[%c0_46, %c0_47] : memref<8x1xf32, #tpu.memory_space<vmem>>, vector<8x1xf32>
      tpu.vector_store %arg8[%c0_46, %c0_47], %68 {strides = array<i32>} : memref<8x1xf32, #tpu.memory_space<vmem>>, vector<8x1xf32>,
      %cst_48 = arith.constant 0.000000e+00 : f32
      %70 = vector.broadcast %cst_48 : f32 to vector<8x1xf32>
      %c0_49 = arith.constant 0 : index
      %c0_50 = arith.constant 0 : index
      %71 = vector.load %arg9[%c0_49, %c0_50] : memref<8x1xf32, #tpu.memory_space<vmem>>, vector<8x1xf32>
      tpu.vector_store %arg9[%c0_49, %c0_50], %70 {strides = array<i32>} : memref<8x1xf32, #tpu.memory_space<vmem>>, vector<8x1xf32>,
      %cst_51 = arith.constant 0xFF800000 : f32
      %72 = vector.broadcast %cst_51 : f32 to vector<8x1xf32>
      %c0_52 = arith.constant 0 : index
      %c0_53 = arith.constant 0 : index
      %73 = vector.load %arg10[%c0_52, %c0_53] : memref<8x1xf32, #tpu.memory_space<vmem>>, vector<8x1xf32>
      tpu.vector_store %arg10[%c0_52, %c0_53], %72 {strides = array<i32>} : memref<8x1xf32, #tpu.memory_space<vmem>>, vector<8x1xf32>,
      %c2147483647_i32_54 = arith.constant 2147483647 : i32
      %74 = vector.broadcast %c2147483647_i32_54 : i32 to vector<8x1xi32>
      %c0_55 = arith.constant 0 : index
      %c0_56 = arith.constant 0 : index
      %75 = vector.load %arg11[%c0_55, %c0_56] : memref<8x1xi32, #tpu.memory_space<vmem>>, vector<8x1xi32>
      tpu.vector_store %arg11[%c0_55, %c0_56], %74 {strides = array<i32>} : memref<8x1xi32, #tpu.memory_space<vmem>>, vector<8x1xi32>,
      %cst_57 = arith.constant 0.000000e+00 : f32
      %76 = vector.broadcast %cst_57 : f32 to vector<8x1xf32>
      %c0_58 = arith.constant 0 : index
      %c0_59 = arith.constant 0 : index
      %77 = vector.load %arg12[%c0_58, %c0_59] : memref<8x1xf32, #tpu.memory_space<vmem>>, vector<8x1xf32>
      tpu.vector_store %arg12[%c0_58, %c0_59], %76 {strides = array<i32>} : memref<8x1xf32, #tpu.memory_space<vmem>>, vector<8x1xf32>,
    } else {
    }
    %c0 = arith.constant 0 : index
    %c0_4 = arith.constant 0 : index
    %8 = vector.load %arg2[%c0, %c0_4] : memref<8x32xf32, #tpu.memory_space<vmem>>, vector<8x32xf32>
    %9 = arith.truncf %8 : vector<8x32xf32> to vector<8x32xbf16>
    %c0_5 = arith.constant 0 : index
    %c0_6 = arith.constant 0 : index
    %10 = vector.load %arg3[%c0_5, %c0_6] : memref<128x32xbf16, #tpu.memory_space<vmem>>, vector<128x32xbf16>
    %cst = arith.constant dense<0.000000e+00> : vector<8x128xf32>
    %11 = tpu.matmul %9, %10, %cst {dimension_numbers = #tpu.dot_dimension_numbers<[1], [1], [0], [0], [0, 0, 1, 0], [], []>} : vector<8x32xbf16>, vector<128x32xbf16>, vector<8x128xf32> -> vector<8x128xf32>
    %c0_7 = arith.constant 0 : index
    %c0_8 = arith.constant 0 : index
    %12 = vector.load %arg4[%c0_7, %c0_8] : memref<1x128xf32, #tpu.memory_space<vmem>>, vector<1x128xf32>
    %13 = vector.broadcast %12 : vector<1x128xf32> to vector<8x128xf32>
    %14 = arith.addf %11, %13 : vector<8x128xf32>
    %c0_9 = arith.constant 0 : index
    %c0_10 = arith.constant 0 : index
    %15 = vector.load %arg5[%c0_9, %c0_10] : memref<8x1xi32, #tpu.memory_space<vmem>>, vector<8x1xi32>
    %c128_i32 = arith.constant 128 : i32
    %16 = arith.muli %arg1, %c128_i32 : i32
    %17 = tpu.iota {dimensions = array<i32: 1>} : vector<8x128xi32>
    %18 = vector.broadcast %16 : i32 to vector<8x128xi32>
    %19 = arith.addi %18, %17 : vector<8x128xi32>
    %cst_11 = arith.constant dense<0xFF800000> : vector<8xf32>
    %20 = vector.multi_reduction <maximumf>, %14, %cst_11 [1] : vector<8x128xf32> to vector<8xf32>
    %21 = vector.shape_cast %20 : vector<8xf32> to vector<8x1xf32>
    %c0_12 = arith.constant 0 : index
    %c0_13 = arith.constant 0 : index
    %22 = vector.load %arg8[%c0_12, %c0_13] : memref<8x1xf32, #tpu.memory_space<vmem>>, vector<8x1xf32>
    %23 = arith.maximumf %22, %21 : vector<8x1xf32>
    %c0_14 = arith.constant 0 : index
    %c0_15 = arith.constant 0 : index
    %24 = vector.load %arg9[%c0_14, %c0_15] : memref<8x1xf32, #tpu.memory_space<vmem>>, vector<8x1xf32>
    %c0_16 = arith.constant 0 : index
    %c0_17 = arith.constant 0 : index
    %25 = vector.load %arg8[%c0_16, %c0_17] : memref<8x1xf32, #tpu.memory_space<vmem>>, vector<8x1xf32>
    %26 = arith.subf %25, %23 : vector<8x1xf32>
    %27 = math.exp %26 : vector<8x1xf32>
    %28 = arith.mulf %24, %27 : vector<8x1xf32>
    %29 = vector.broadcast %23 : vector<8x1xf32> to vector<8x128xf32>
    %30 = arith.subf %14, %29 : vector<8x128xf32>
    %31 = math.exp %30 : vector<8x128xf32>
    %cst_18 = arith.constant dense<0.000000e+00> : vector<8xf32>
    %32 = vector.multi_reduction <add>, %31, %cst_18 [1] : vector<8x128xf32> to vector<8xf32>
    %33 = vector.shape_cast %32 : vector<8xf32> to vector<8x1xf32>
    %34 = arith.addf %28, %33 : vector<8x1xf32>
    %c0_19 = arith.constant 0 : index
    %c0_20 = arith.constant 0 : index
    %35 = vector.load %arg9[%c0_19, %c0_20] : memref<8x1xf32, #tpu.memory_space<vmem>>, vector<8x1xf32>
    tpu.vector_store %arg9[%c0_19, %c0_20], %34 {strides = array<i32>} : memref<8x1xf32, #tpu.memory_space<vmem>>, vector<8x1xf32>,
    %c0_21 = arith.constant 0 : index
    %c0_22 = arith.constant 0 : index
    %36 = vector.load %arg8[%c0_21, %c0_22] : memref<8x1xf32, #tpu.memory_space<vmem>>, vector<8x1xf32>
    tpu.vector_store %arg8[%c0_21, %c0_22], %23 {strides = array<i32>} : memref<8x1xf32, #tpu.memory_space<vmem>>, vector<8x1xf32>,
    %c0_23 = arith.constant 0 : index
    %c0_24 = arith.constant 0 : index
    %37 = vector.load %arg12[%c0_23, %c0_24] : memref<8x1xf32, #tpu.memory_space<vmem>>, vector<8x1xf32>
    %38 = vector.broadcast %15 : vector<8x1xi32> to vector<8x128xi32>
    %39 = arith.cmpi eq, %19, %38 : vector<8x128xi32>
    %cst_25 = arith.constant 0.000000e+00 : f32
    %40 = vector.broadcast %cst_25 : f32 to vector<8x128xf32>
    %41 = arith.select %39, %14, %40 : vector<8x128xi1>, vector<8x128xf32>
    %cst_26 = arith.constant dense<0.000000e+00> : vector<8xf32>
    %42 = vector.multi_reduction <add>, %41, %cst_26 [1] : vector<8x128xf32> to vector<8xf32>
    %43 = vector.shape_cast %42 : vector<8xf32> to vector<8x1xf32>
    %44 = arith.addf %37, %43 : vector<8x1xf32>
    %c0_27 = arith.constant 0 : index
    %c0_28 = arith.constant 0 : index
    %45 = vector.load %arg12[%c0_27, %c0_28] : memref<8x1xf32, #tpu.memory_space<vmem>>, vector<8x1xf32>
    tpu.vector_store %arg12[%c0_27, %c0_28], %44 {strides = array<i32>} : memref<8x1xf32, #tpu.memory_space<vmem>>, vector<8x1xf32>,
    %46 = vector.broadcast %21 : vector<8x1xf32> to vector<8x128xf32>
    %47 = arith.cmpf oeq, %14, %46 : vector<8x128xf32>
    %c2147483647_i32 = arith.constant 2147483647 : i32
    %48 = vector.broadcast %c2147483647_i32 : i32 to vector<8x128xi32>
    %49 = arith.select %47, %19, %48 : vector<8x128xi1>, vector<8x128xi32>
    %cst_29 = arith.constant dense<2147483647> : vector<8xi32>
    %50 = vector.multi_reduction <minsi>, %49, %cst_29 [1] : vector<8x128xi32> to vector<8xi32>
    %51 = vector.shape_cast %50 : vector<8xi32> to vector<8x1xi32>
    %c0_30 = arith.constant 0 : index
    %c0_31 = arith.constant 0 : index
    %52 = vector.load %arg10[%c0_30, %c0_31] : memref<8x1xf32, #tpu.memory_space<vmem>>, vector<8x1xf32>
    %53 = arith.cmpf ogt, %21, %52 : vector<8x1xf32>
    %c0_32 = arith.constant 0 : index
    %c0_33 = arith.constant 0 : index
    %54 = vector.load %arg11[%c0_32, %c0_33] : memref<8x1xi32, #tpu.memory_space<vmem>>, vector<8x1xi32>
    %55 = arith.select %53, %51, %54 : vector<8x1xi1>, vector<8x1xi32>
    %c0_34 = arith.constant 0 : index
    %c0_35 = arith.constant 0 : index
    %56 = vector.load %arg11[%c0_34, %c0_35] : memref<8x1xi32, #tpu.memory_space<vmem>>, vector<8x1xi32>
    tpu.vector_store %arg11[%c0_34, %c0_35], %55 {strides = array<i32>} : memref<8x1xi32, #tpu.memory_space<vmem>>, vector<8x1xi32>,
    %c0_36 = arith.constant 0 : index
    %c0_37 = arith.constant 0 : index
    %57 = vector.load %arg10[%c0_36, %c0_37] : memref<8x1xf32, #tpu.memory_space<vmem>>, vector<8x1xf32>
    %58 = arith.select %53, %21, %57 : vector<8x1xi1>, vector<8x1xf32>
    %c0_38 = arith.constant 0 : index
    %c0_39 = arith.constant 0 : index
    %59 = vector.load %arg10[%c0_38, %c0_39] : memref<8x1xf32, #tpu.memory_space<vmem>>, vector<8x1xf32>
    tpu.vector_store %arg10[%c0_38, %c0_39], %58 {strides = array<i32>} : memref<8x1xf32, #tpu.memory_space<vmem>>, vector<8x1xf32>,
    %c0_i32_40 = arith.constant 0 : i32
    %60 = arith.cmpi eq, %arg1, %c0_i32_40 : i32
    %61 = arith.extui %60 : i1 to i32
    %c0_i32_41 = arith.constant 0 : i32
    %62 = arith.cmpi ne, %61, %c0_i32_41 : i32
    scf.if %62 {
      %c0_45 = arith.constant 0 : index
      %c0_46 = arith.constant 0 : index
      %68 = vector.load %arg8[%c0_45, %c0_46] : memref<8x1xf32, #tpu.memory_space<vmem>>, vector<8x1xf32>
      %c0_47 = arith.constant 0 : index
      %c0_48 = arith.constant 0 : index
      %69 = vector.load %arg9[%c0_47, %c0_48] : memref<8x1xf32, #tpu.memory_space<vmem>>, vector<8x1xf32>
      %70 = math.log %69 : vector<8x1xf32>
      %71 = arith.addf %68, %70 : vector<8x1xf32>
      %c0_49 = arith.constant 0 : index
      %c0_50 = arith.constant 0 : index
      %72 = vector.load %arg12[%c0_49, %c0_50] : memref<8x1xf32, #tpu.memory_space<vmem>>, vector<8x1xf32>
      %73 = arith.subf %71, %72 : vector<8x1xf32>
      %c8_i32 = arith.constant 8 : i32
      %74 = arith.muli %arg0, %c8_i32 : i32
      %75 = tpu.iota {dimensions = array<i32: 0>} : vector<8x1xi32>
      %76 = vector.broadcast %74 : i32 to vector<8x1xi32>
      %77 = arith.addi %76, %75 : vector<8x1xi32>
      %c8_i32_51 = arith.constant 8 : i32
      %78 = vector.broadcast %c8_i32_51 : i32 to vector<8x1xi32>
      %79 = arith.cmpi slt, %77, %78 : vector<8x1xi32>
      %c0_52 = arith.constant 0 : index
      %80 = memref.load %arg13[%c0_52] : memref<2xf32, #tpu.memory_space<smem>>
      %cst_53 = arith.constant 0.000000e+00 : f32
      %81 = vector.broadcast %cst_53 : f32 to vector<8x1xf32>
      %82 = arith.select %79, %73, %81 : vector<8x1xi1>, vector<8x1xf32>
      %83 = vector.shape_cast %82 : vector<8x1xf32> to vector<1x8x1xf32>
      %cst_54 = arith.constant dense<0.000000e+00> : vector<1xf32>
      %84 = vector.multi_reduction <add>, %83, %cst_54 [1, 2] : vector<1x8x1xf32> to vector<1xf32>
      %85 = vector.shape_cast %84 : vector<1xf32> to vector<1x1x1xf32>
      %86 = vector.extract %85[0, 0, 0] : f32 from vector<1x1x1xf32>
      %87 = arith.addf %80, %86 : f32
      %c0_55 = arith.constant 0 : index
      %88 = memref.load %arg13[%c0_55] : memref<2xf32, #tpu.memory_space<smem>>
      memref.store %87, %arg13[%c0_55] : memref<2xf32, #tpu.memory_space<smem>>
      %c1 = arith.constant 1 : index
      %89 = memref.load %arg13[%c1] : memref<2xf32, #tpu.memory_space<smem>>
      %c0_56 = arith.constant 0 : index
      %c0_57 = arith.constant 0 : index
      %90 = vector.load %arg11[%c0_56, %c0_57] : memref<8x1xi32, #tpu.memory_space<vmem>>, vector<8x1xi32>
      %91 = arith.cmpi eq, %90, %15 : vector<8x1xi32>
      %92 = arith.andi %79, %91 : vector<8x1xi1>
      %cst_58 = arith.constant 1.000000e+00 : f32
      %cst_59 = arith.constant 0.000000e+00 : f32
      %93 = vector.broadcast %cst_58 : f32 to vector<8x1xf32>
      %94 = vector.broadcast %cst_59 : f32 to vector<8x1xf32>
      %95 = arith.select %92, %93, %94 : vector<8x1xi1>, vector<8x1xf32>
      %96 = vector.shape_cast %95 : vector<8x1xf32> to vector<1x8x1xf32>
      %cst_60 = arith.constant dense<0.000000e+00> : vector<1xf32>
      %97 = vector.multi_reduction <add>, %96, %cst_60 [1, 2] : vector<1x8x1xf32> to vector<1xf32>
      %98 = vector.shape_cast %97 : vector<1xf32> to vector<1x1x1xf32>
      %99 = vector.extract %98[0, 0, 0] : f32 from vector<1x1x1xf32>
      %100 = arith.addf %89, %99 : f32
      %c1_61 = arith.constant 1 : index
      %101 = memref.load %arg13[%c1_61] : memref<2xf32, #tpu.memory_space<smem>>
      memref.store %100, %arg13[%c1_61] : memref<2xf32, #tpu.memory_space<smem>>
    } else {
    }
    %c0_i32_42 = arith.constant 0 : i32
    %63 = arith.cmpi eq, %arg0, %c0_i32_42 : i32
    %c0_i32_43 = arith.constant 0 : i32
    %64 = arith.cmpi eq, %arg1, %c0_i32_43 : i32
    %65 = arith.andi %63, %64 : i1
    %66 = arith.extui %65 : i1 to i32
    %c0_i32_44 = arith.constant 0 : i32
    %67 = arith.cmpi ne, %66, %c0_i32_44 : i32
    scf.if %67 {
      %c0_45 = arith.constant 0 : index
      %68 = memref.load %arg13[%c0_45] : memref<2xf32, #tpu.memory_space<smem>>
      %cst_46 = arith.constant 1.250000e-01 : f32
      %69 = arith.mulf %68, %cst_46 : f32
      %c0_47 = arith.constant 0 : index
      %c0_48 = arith.constant 0 : index
      %70 = memref.load %arg6[%c0_47, %c0_48] : memref<1x1xf32, #tpu.memory_space<smem>>
      memref.store %69, %arg6[%c0_47, %c0_48] : memref<1x1xf32, #tpu.memory_space<smem>>
      %c1 = arith.constant 1 : index
      %71 = memref.load %arg13[%c1] : memref<2xf32, #tpu.memory_space<smem>>
      %cst_49 = arith.constant 1.250000e+01 : f32
      %72 = arith.mulf %71, %cst_49 : f32
      %c0_50 = arith.constant 0 : index
      %c0_51 = arith.constant 0 : index
      %73 = memref.load %arg7[%c0_50, %c0_51] : memref<1x1xf32, #tpu.memory_space<smem>>
      memref.store %72, %arg7[%c0_50, %c0_51] : memref<1x1xf32, #tpu.memory_space<smem>>
    } else {
    }
    return
  }
  func.func @transform_0(%arg0: i32, %arg1: i32) -> (i32, i32) {
    %c0_i32 = arith.constant 0 : i32
    %c0_i32_0 = arith.constant 0 : i32
    return %arg0, %c0_i32 : i32, i32
  }
  func.func @transform_1(%arg0: i32, %arg1: i32) -> (i32, i32) {
    %c0_i32 = arith.constant 0 : i32
    %c0_i32_0 = arith.constant 0 : i32
    %c0_i32_1 = arith.constant 0 : i32
    return %c0_i32, %c0_i32_0 : i32, i32
  }
  func.func @transform_2(%arg0: i32, %arg1: i32) -> (i32, i32) {
    %c0_i32 = arith.constant 0 : i32
    %c0_i32_0 = arith.constant 0 : i32
    return %c0_i32, %arg1 : i32, i32
  }
  func.func @transform_3(%arg0: i32, %arg1: i32) -> (i32, i32) {
    %c0_i32 = arith.constant 0 : i32
    %c0_i32_0 = arith.constant 0 : i32
    return %arg0, %c0_i32 : i32, i32
  }
  func.func @transform_4(%arg0: i32, %arg1: i32) -> (i32, i32) {
    %c0_i32 = arith.constant 0 : i32
    %c0_i32_0 = arith.constant 0 : i32
    %c0_i32_1 = arith.constant 0 : i32
    return %c0_i32, %c0_i32_0 : i32, i32
  }
  func.func @transform_5(%arg0: i32, %arg1: i32) -> (i32, i32) {
    %c0_i32 = arith.constant 0 : i32
    %c0_i32_0 = arith.constant 0 : i32
    %c0_i32_1 = arith.constant 0 : i32
    return %c0_i32, %c0_i32_0 : i32, i32
  }
}

</mosaic_0001>

<bundles_post_ra>
// kernel: tpu_custom_call.1
= control target key start
LH: loop header
LB: loop body
LE: loop exit
PB: predicated region body
PF: predicated region fallthrough
CT: control target
= control target key end

     0   :  { %11 = vsyncpa [#allocation9], 0  ;;  %v409_v1 = vmov 0.0   ;;  %vm106_vm0 = vcmask 261120   ;;  %vm410_vm1 = vmmov 0   ;;  %s520_s0 = inlined_call_operand.vmem [shape: f32[8,32], index: 0, kind: input, shape index: {}]   ;;  %s521_s1 = inlined_call_operand.vmem [shape: bf16[128,32], index: 1, kind: input, shape index: {}]   ;;  %s522_s2 = inlined_call_operand.vmem [shape: f32[1,128], index: 2, kind: input, shape index: {}]   ;;  %s523_s3 = inlined_call_operand.vmem [shape: s32[8,1], index: 3, kind: input, shape index: {}]   ;;  %s524_s4 = inlined_call_operand.hbm [shape: f32[1,1], index: 4, kind: output, shape index: {0}]   ;;  %s525_s5 = inlined_call_operand.hbm [shape: f32[1,1], index: 5, kind: output, shape index: {1}]  }
   0x1   :  { %v375_v0 = vld [vmem:[%s521_s1 + $0x38] sm:$0xff]   ;;  %342 = vmatprep.subr.bf16.mxu0 %v409_v1  ;;  %v376_v3 = vld [vmem:[%s521_s1 + $0x30] sm:$0xff]   ;;  %358 = vmatprep.mubr.msk.bf16.mxu0 %vm410_vm1, %v409_v1 }
   0x2   :  { %v132_v2 = vsel %vm106_vm0, %v375_v0, 0  ;;  %v129_v4 = vsel %vm106_vm0, %v376_v3, 0 }
   0x3   :  { %343 = vmatpush3.bf16.xpose.msra.mxu0 %v132_v2 }
   0x4   :  { %344 = vmatprep.subr.bf16.mxu0 %v409_v1 }
   0x5   :  { %12 = vsyncpa [#allocation11], 0  ;;  %v377_v5 = vld [vmem:[%s521_s1 + $0x28] sm:$0xff]   ;;  %v378_v7 = vld [vmem:[%s521_s1 + $0x20] sm:$0xff]   ;;  %vm35_vm2 = vcmask 7168   ;;  %v411_v24 = vmov -inf   ;;  %v176_v27 = vlaneseq }
   0x6   :  { %v126_v6 = vsel %vm106_vm0, %v377_v5, 0  ;;  %v123_v8 = vsel %vm106_vm0, %v378_v7, 0  ;;  %v379_v9 = vld [vmem:[%s521_s1 + $0x18] sm:$0xff]   ;;  %v380_v11 = vld [vmem:[%s521_s1 + $0x10] sm:$0xff]   ;;  %v381_v13 = vld [vmem:[%s521_s1 + $0x8] sm:$0xff]   ;;  %38 = vst.msk [vmem:[#allocation4] sm:$0xff] %vm35_vm2, %v411_v24 }
   0x7   :  { %v120_v10 = vsel %vm106_vm0, %v379_v9, 0  ;;  %v117_v12 = vsel %vm106_vm0, %v380_v11, 0  ;;  %v114_v14 = vsel %vm106_vm0, %v381_v13, 0  ;;  %v382_v15 = vld [vmem:[%s521_s1] sm:$0xff]   ;;  %36 = vst.msk [vmem:[#allocation2] sm:$0xff] %vm35_vm2, %v411_v24  ;;  %37 = vst.msk [vmem:[#allocation3] sm:$0xff] %vm35_vm2, %v409_v1 }
   0x8   :  { %v111_v16 = vsel %vm106_vm0, %v382_v15, 0  ;;  %v41_v17 = vld [vmem:[%s520_s0] sm:$0xff]  ;;  %40 = vst.msk [vmem:[#allocation6] sm:$0xff] %vm35_vm2, %v409_v1  ;;  %v412_v26 = vmov 0   ;;  %v177_v30 = vand.u32 127, %v176_v27  ;;  %s414_s15 = smov [#allocation8]  }
   0x9   :  { %v42_v18 = vpack.c.bf16 %v41_v17, %v41_v17  ;;  %v321_v19 = vld [vmem:[%s522_s2] ss:$0 sm:$0xff]  ;;  %373 = vset.pattern.permute.xlu0 %v412_v26  ;;  %374 = vset.pattern.permute.xlu1 %v412_v26  ;;  %v413_v49 = vmov 2147483647   ;;  %s415_s18 = smov [#allocation10]  }
   0xa   :  { %v174_v38 = vld [vmem:[%s523_s3] sm:$0xff]  ;;  %39 = vst.msk [vmem:[#allocation5] sm:$0xff] %vm35_vm2, %v413_v49 }
   0xb   :  { %345 = vmatpush3.bf16.xpose.msra.mxu0 %v129_v4 }
   0xc   :  { %346 = vmatprep.subr.bf16.mxu0 %v409_v1 }
   0xd   :  { %v229_v28 = vld [vmem:[#allocation4] sm:$0xff] }
   0xe   :  { %v182_v29 = vld [vmem:[#allocation2] sm:$0xff]  ;;  %v184_v52 = vld [vmem:[#allocation3] sm:$0xff] }
   0xf   :  { %v203_v61 = vld [vmem:[#allocation6] sm:$0xff] }
  0x11   :  { %v231_v60 = vld [vmem:[#allocation5] sm:$0xff] }
  0x13   :  { %347 = vmatpush3.bf16.xpose.msra.mxu0 %v126_v6 }
  0x14   :  { %348 = vmatprep.subr.bf16.mxu0 %v409_v1 }
  0x1b   :  { %349 = vmatpush3.bf16.xpose.msra.mxu0 %v123_v8 }
  0x1c   :  { %350 = vmatprep.subr.bf16.mxu0 %v409_v1 }
  0x23   :  { %351 = vmatpush3.bf16.xpose.msra.mxu0 %v120_v10 }
  0x24   :  { %352 = vmatprep.subr.bf16.mxu0 %v409_v1 }
  0x2b   :  { %353 = vmatpush3.bf16.xpose.msra.mxu0 %v117_v12 }
  0x2c   :  { %354 = vmatprep.subr.bf16.mxu0 %v409_v1 }
  0x33   :  { %355 = vmatpush3.bf16.xpose.msra.mxu0 %v114_v14 }
  0x34   :  { %356 = vmatprep.subr.bf16.mxu0 %v409_v1 }
  0x3b   :  { %357 = vmatpush3.bf16.xpose.msra.mxu0 %v111_v16 }
  0x42   :  { %359 = vmatmul.mubr.msk.bf16.vlgmr.msra.gmra.mxu0 %vm106_vm0, %v42_v18 }
 0x102   :  { %v168_v20 = vpop.f32.mrf.mxu0 }
 0x103   :  { %v169_v21 = vadd.f32 %v321_v19, %v168_v20 }
 0x104   :  { %v360_v22 = vpop.f32.mrf.mxu0 }
 0x105   :  { %180 = vmax.xlane.f32.xlu0 %v169_v21 }
 0x106   :  { %v171_v23 = vpop.f32.mrf.mxu0 }
 0x108   :  { %v361_v25 = vpop.f32.mrf.mxu0 }
 0x18e   :  { %v181_v31 = vpop.xlane.xlu0 %180 }
 0x18f   :  { %vm230_vm3 = vcmp.gt.f32.partialorder %v181_v31, %v229_v28  ;;  %v183_v32 = vmax.f32 %v182_v29, %v181_v31  ;;  %vm213_vm4 = vcmp.eq.f32.partialorder %v169_v21, %v181_v31 }
 0x190   :  { %v235_v33 = vsel %vm230_vm3, %v181_v31, %v229_v28  ;;  %v214_v34 = vsel %vm213_vm4, %v177_v30, 2147483647 }
 0x191   :  { %236 = vst.msk [vmem:[#allocation4] sm:$0xff] %vm35_vm2, %v235_v33  ;;  %191 = vperm.xlu0 %373, %v183_v32   ;;  %v185_v35 = vsub.f32 %v182_v29, %v183_v32  ;;  %202 = vst.msk [vmem:[#allocation2] sm:$0xff] %vm35_vm2, %v183_v32  ;;  %v216_v36 = vshra.s32 %v214_v34, 16  ;;  %v215_v42 = vand.u32 65535, %v214_v34 }
 0x193   :  { %v218_v37 = vcvt.s32.f32 %v216_v36  ;;  %v217_v45 = vcvt.s32.f32 %v215_v42  ;;  %v186_v50 = vmul.f32 1.442695, %v185_v35 }
 0x195   :  { %219 = vmin.xlane.f32.xlu1 %v218_v37 }
 0x198   :  { %v240_v6 = vld [vmem:[#allocation2] sm:$0xff] }
 0x1a6   :  { %205 = vperm.xlu1 %374, %v174_v38  }
 0x20c   :  { %v192_v39 = vpop.permute.xlu0 %191 }
 0x20d   :  { %v194_v40 = vsub.f32 %v169_v21, %v192_v39 }
 0x20f   :  { %v195_v41 = vmul.f32 1.442695, %v194_v40 }
 0x211   :  { %383 = vpow2.f32 %v195_v41 }
 0x212   :  { %385 = vpow2.f32 %v186_v50 }
 0x21e   :  { %v384_v43 = vpop.eup %383  ;;  %v220_v44 = vpop.xlane.xlu1 %219 }
 0x21f   :  { %197 = vadd.xlane.f32.xlu1 %v384_v43  ;;  %vm221_vm5 = vcmp.eq.f32.partialorder %v218_v37, %v220_v44  ;;  %v386_v51 = vpop.eup %385  ;;  %v226_v53 = vcvt.f32.s32 %v220_v44 }
 0x220   :  { %v222_v46 = vsel %vm221_vm5, %v217_v45, inf  ;;  %v188_v54 = vmul.f32 %v386_v51, %v184_v52 }
 0x221   :  { %223 = vmin.xlane.f32.xlu0 %v222_v46  ;;  %v227_v58 = vshll.u32 %v226_v53, 16 }
 0x222   :  { %v206_v47 = vpop.permute.xlu1 %205 }
 0x223   :  { %vm207_vm6 = vcmp.eq.s32.totalorder %v177_v30, %v206_v47 }
 0x224   :  { %v208_v48 = vsel %vm207_vm6, %v169_v21, 0.0 }
 0x225   :  { %209 = vadd.xlane.f32.xlu1 %v208_v48 }
 0x2a8   :  { %v198_v55 = vpop.xlane.xlu1 %197 }
 0x2a9   :  { %v199_v56 = vadd.f32 %v198_v55, %v188_v54 }
 0x2aa   :  { %v224_v57 = vpop.xlane.xlu0 %223 }
 0x2ab   :  { %201 = vst.msk [vmem:[#allocation3] sm:$0xff] %vm35_vm2, %v199_v56  ;;  %v225_v59 = vcvt.f32.s32 %v224_v57 }
 0x2ad   :  { %v228_v62 = vadd.s32 %v227_v58, %v225_v59 }
 0x2ae   :  { %v210_v63 = vpop.xlane.xlu1 %209 }
 0x2af   :  { %v232_v0 = vsel %vm230_vm3, %v228_v62, %v231_v60  ;;  %v211_v2 = vadd.f32 %v210_v63, %v203_v61 }
 0x2b0   :  { %233 = vst.msk [vmem:[#allocation5] sm:$0xff] %vm35_vm2, %v232_v0 }
 0x2b1   :  { %212 = vst.msk [vmem:[#allocation6] sm:$0xff] %vm35_vm2, %v211_v2 }
 0x2b2   :  { %v241_v3 = vld [vmem:[#allocation3] sm:$0xff] }
 0x2b3   :  { %387 = vlog2.f32 %v241_v3 }
 0x2b7   :  { %v269_v7 = vld [vmem:[#allocation5] sm:$0xff] }
 0x2b8   :  { %v245_v9 = vld [vmem:[#allocation6] sm:$0xff]  ;;  %vm270_vm7 = vcmp.eq.s32.totalorder %v269_v7, %v174_v38 }
 0x2b9   :  { %v272_v12 = vsel %vm270_vm7, 1.0, %v409_v1 }
 0x2ba   :  { %v273_v13 = vsel %vm35_vm2, %v272_v12, 0.0 }
 0x2c0   :  { %v388_v4 = vpop.eup %387 }
 0x2c1   :  { %v243_v5 = vmul.f32 0.6931472, %v388_v4 }
 0x2c3   :  { %v244_v8 = vadd.f32 %v243_v5, %v240_v6 }
 0x2c5   :  { %v246_v10 = vsub.f32 %v244_v8, %v245_v9 }
 0x2c7   :  { %v255_v11 = vsel %vm35_vm2, %v246_v10, 0.0 }
 0x2c8   :  { %256 = vadd.xlane.f32.xlu1 %v255_v11 }
 0x2cc   :  { %274 = vadd.xlane.f32.xlu1 %v273_v13 }
 0x351   :  { %v257_v14 = vpop.xlane.xlu1 %256 }
 0x352   :  { %v258_v15 = vrot.slane %v257_v14, 4 }
 0x354   :  { %v259_v16 = vadd.f32 %v258_v15, %v257_v14 }
 0x355   :  { %v275_v17 = vpop.xlane.xlu1 %274 }
 0x356   :  { %v260_v18 = vrot.slane %v259_v16, 2  ;;  %v276_v19 = vrot.slane %v275_v17, 4 }
 0x358   :  { %v277_v20 = vadd.f32 %v276_v19, %v275_v17  ;;  %v261_v21 = vadd.f32 %v260_v18, %v259_v16 }
 0x35a   :  { %v278_v22 = vrot.slane %v277_v20, 2  ;;  %v262_v23 = vrot.slane %v261_v21, 1 }
 0x35c   :  { %v279_v24 = vadd.f32 %v278_v22, %v277_v20  ;;  %v263_v25 = vadd.f32 %v262_v23, %v261_v21 }
 0x35e   :  { %362 = vpush %v263_v25  ;;  %v280_v26 = vrot.slane %v279_v24, 1 }
 0x360   :  { %v281_v27 = vadd.f32 %v280_v26, %v279_v24 }
 0x362   :  { %364 = vpush %v281_v27 }
 0x38f   :  { %s363_s2 = spop %362 }
 0x390   :  { %s289_s3 = smul.f32 0.125, %s363_s2 }
 0x392   :  { %291 = sst [smem:[#allocation8]] %s289_s3 }
 0x393   :  { %s365_s13 = spop %364 }
 0x394   :  { %s293_s14 = smul.f32 12.5, %s365_s13 }
 0x395   :  { %303 = dma.smem_to_hbm %s414_s15, 16, %s524_s4, [#allocation9]  }
 0x396   :  { %295 = sst [smem:[#allocation10]] %s293_s14 }
 0x397   :  { %311 = dma.smem_to_hbm %s415_s18, 16, %s525_s5, [#allocation11]  }
 0x398   :  { %405 = dma.done.wait [#allocation9], 16  }
 0x399   :  { %406 = vsyncadd [#allocation9], 4294967280 }
 0x39a   :  { %407 = dma.done.wait [#allocation11], 16  }
 0x39b   :  { %408 = vsyncadd [#allocation11], 4294967280 }
 0x39c   :  { %318 = sfence }
 0x39d   :  { %319 = vsyncpa [#allocation9], 1 }
 0x39e   :  { %320 = vsyncpa [#allocation11], 1 }

</bundles_post_ra>
